<compile_context>
chip_gen: v7x
topology: tpu7x:2x2x1
jax: 0.10.0
libtpu: 0.0.40
codegen_flags: <defaults>
</compile_context>

<pallas_src>
import functools

import jax
import jax.numpy as jnp
from jax.experimental import pallas as pl
from jax.experimental.pallas import tpu as pltpu


def _round_up(x: int, m: int) -> int:
    return (x + m - 1) // m * m


def tower_kernel(x_ref, w1_ref, b1_ref, w2_ref, b2_ref, o_ref):
    cdt = w1_ref.dtype
    # First linear + ReLU: cast the activation tile in-kernel, f32 MXU acc.
    x = x_ref[...].astype(cdt)
    h = jnp.dot(x, w1_ref[...], preferred_element_type=jnp.float32)
    h = jnp.maximum(h + b1_ref[...], 0.0)                  # (TB, d_h) + (1, d_h)
    # Second linear + ReLU.
    y = jnp.dot(h.astype(cdt), w2_ref[...], preferred_element_type=jnp.float32)
    y = jnp.maximum(y + b2_ref[...], 0.0)                  # (TB, d_e) + (1, d_e)
    o_ref[...] = y.astype(o_ref.dtype)


def prepare_tower_params(w1, b1, w2, b2, compute_dtype=jnp.bfloat16):
    """One-time weight prep: cast to compute dtype, zero-pad hidden dim to 128k.

    w1: [input_dim, hidden_dim], b1: [hidden_dim]
    w2: [hidden_dim, embed_dim], b2: [embed_dim]
    Padding the hidden dim is semantics-preserving (zero cols + zero bias ->
    relu(0)=0 -> zero rows of w2 contribute nothing) and never touches HBM per
    step since the weights stay VMEM-resident across grid iterations.
    """
    input_dim, hidden_dim = w1.shape
    embed_dim = w2.shape[1]
    d_h = _round_up(hidden_dim, 128)

    w1p = jnp.zeros((input_dim, d_h), compute_dtype)
    w1p = w1p.at[:, :hidden_dim].set(w1.astype(compute_dtype))
    b1p = jnp.zeros((1, d_h), jnp.float32)
    b1p = b1p.at[0, :hidden_dim].set(b1.astype(jnp.float32).reshape(-1))
    w2p = jnp.zeros((d_h, embed_dim), compute_dtype)
    w2p = w2p.at[:hidden_dim, :].set(w2.astype(compute_dtype))
    b2p = b2.astype(jnp.float32).reshape(1, embed_dim)
    return w1p, b1p, w2p, b2p


def _choose_batch_tile(batch, tb_max, bytes_per_row, resident_bytes):
    """Balanced batch tile (multiple of 8) that fits VMEM with headroom."""
    budget = 40 * 1024 * 1024  # headroom under v7x's 64 MiB physical VMEM
    if batch % 8 != 0 and batch <= tb_max:
        # Single full-array block (block dim == array dim satisfies the rule).
        return batch, 1
    tb = max(8, min(_round_up(batch, 8), _round_up(tb_max, 8)))
    num_tiles = pl.cdiv(batch, tb)
    if batch >= 2048:
        num_tiles = max(num_tiles, 2)  # keep both v7x TensorCores busy
    tb = _round_up(pl.cdiv(batch, num_tiles), 8)
    while tb > 8 and resident_bytes + 2 * tb * bytes_per_row > budget:
        tb = max(8, _round_up(tb // 2, 8))
    return tb, pl.cdiv(batch, tb)


@functools.partial(jax.jit, static_argnames=("tb_max", "out_dtype"))
def tower_forward(x, w1p, b1p, w2p, b2p, *, tb_max=1024, out_dtype=jnp.float32):
    """y = relu(relu(x @ w1 + b1) @ w2 + b2) with prepared (padded) params."""
    batch, input_dim = x.shape
    d_h = w1p.shape[1]
    embed_dim = w2p.shape[1]
    assert w1p.shape[0] == input_dim

    x_b = jnp.dtype(x.dtype).itemsize
    w_b = jnp.dtype(w1p.dtype).itemsize
    o_b = jnp.dtype(out_dtype).itemsize

    resident_bytes = (input_dim + embed_dim) * d_h * w_b + (d_h + embed_dim) * 4
    bytes_per_row = input_dim * x_b + embed_dim * o_b + d_h * 4  # incl. f32 hidden
    tb, num_tiles = _choose_batch_tile(batch, tb_max, bytes_per_row, resident_bytes)
    # TODO(synk): for very large hidden/embed dims where resident weights alone
    # exceed the VMEM budget, a K-tiled second grid axis would be needed.

    cost = pl.CostEstimate(
        flops=2 * batch * (input_dim * d_h + d_h * embed_dim),
        transcendentals=0,
        bytes_accessed=(batch * input_dim * x_b + batch * embed_dim * o_b
                        + resident_bytes),
    )

    out = pl.pallas_call(
        tower_kernel,
        out_shape=jax.ShapeDtypeStruct((batch, embed_dim), out_dtype),
        grid_spec=pltpu.PrefetchScalarGridSpec(
            num_scalar_prefetch=0,
            grid=(num_tiles,),
            in_specs=[
                pl.BlockSpec((tb, input_dim), lambda i: (i, 0)),    # x: tiled/pipelined
                pl.BlockSpec((input_dim, d_h), lambda i: (0, 0)),   # w1: VMEM-resident
                pl.BlockSpec((1, d_h), lambda i: (0, 0)),           # b1
                pl.BlockSpec((d_h, embed_dim), lambda i: (0, 0)),   # w2
                pl.BlockSpec((1, embed_dim), lambda i: (0, 0)),     # b2
            ],
            out_specs=pl.BlockSpec((tb, embed_dim), lambda i: (i, 0)),
        ),
        compiler_params=pltpu.CompilerParams(
            dimension_semantics=("parallel",),
            vmem_limit_bytes=48 * 1024 * 1024,
        ),
        cost_estimate=cost,
    )(x, w1p, b1p, w2p, b2p)
    return out


def init_params(key, input_dim, hidden_dim, embed_dim):
    """Kaiming-uniform-like init matching nn.Linear shapes (W stored as [in, out])."""
    k1, k2, k3, k4 = jax.random.split(key, 4)
    lim1 = 1.0 / jnp.sqrt(input_dim)
    lim2 = 1.0 / jnp.sqrt(hidden_dim)
    w1 = jax.random.uniform(k1, (input_dim, hidden_dim), jnp.float32, -lim1, lim1)
    b1 = jax.random.uniform(k2, (hidden_dim,), jnp.float32, -lim1, lim1)
    w2 = jax.random.uniform(k3, (hidden_dim, embed_dim), jnp.float32, -lim2, lim2)
    b2 = jax.random.uniform(k4, (embed_dim,), jnp.float32, -lim2, lim2)
    return w1, b1, w2, b2


if __name__ == "__main__":
    # Small shapes consistent with the module: input_dim=16, hidden=32, embed=8.
    input_dim, hidden_dim, embed_dim = 16, 32, 8

    key = jax.random.PRNGKey(0)
    kx, kp, kx2 = jax.random.split(key, 3)
    w1, b1, w2, b2 = init_params(kp, input_dim, hidden_dim, embed_dim)
    params = prepare_tower_params(w1, b1, w2, b2)  # one-time pad + bf16 cast

    def reference(x):
        # Pure-JAX reference on identically bf16-quantized operands (f32 acc).
        xb = x.astype(jnp.bfloat16).astype(jnp.float32)
        w1b = w1.astype(jnp.bfloat16).astype(jnp.float32)
        w2b = w2.astype(jnp.bfloat16).astype(jnp.float32)
        h = jnp.maximum(
            jnp.dot(xb, w1b, precision=jax.lax.Precision.HIGHEST) + b1[None, :], 0.0)
        h = h.astype(jnp.bfloat16).astype(jnp.float32)
        return jnp.maximum(
            jnp.dot(h, w2b, precision=jax.lax.Precision.HIGHEST) + b2[None, :], 0.0)

    # 1) Small, sublane-aligned batch (single grid step).
    x = jax.random.normal(kx, (8, input_dim), jnp.float32)
    out = tower_forward(x, *params)
    jax.block_until_ready(out)
    assert out.shape == (8, embed_dim) and out.dtype == jnp.float32
    ref = reference(x)
    assert jnp.allclose(out, ref, atol=2e-5, rtol=2e-5), (
        f"max abs err = {jnp.max(jnp.abs(out - ref))}")

    # 2) Ragged multi-tile batch (530 rows, tb_max=128 -> balanced tiles with a
    #    partial last block handled by Pallas boundary masking).
    x2 = jax.random.normal(kx2, (530, input_dim), jnp.float32)
    out2 = tower_forward(x2, *params, tb_max=128)
    jax.block_until_ready(out2)
    assert out2.shape == (530, embed_dim)
    ref2 = reference(x2)
    assert jnp.allclose(out2, ref2, atol=2e-5, rtol=2e-5), (
        f"max abs err = {jnp.max(jnp.abs(out2 - ref2))}")

    print("KERNEL_OK")
</pallas_src>

<mosaic_0001>
module attributes {stable_mosaic.version = 11 : i64} {
  func.func @tower_kernel(%arg0: i32, %arg1: memref<8x16xf32, #tpu.memory_space<vmem>>, %arg2: memref<16x128xbf16, #tpu.memory_space<vmem>>, %arg3: memref<1x128xf32, #tpu.memory_space<vmem>>, %arg4: memref<128x8xbf16, #tpu.memory_space<vmem>>, %arg5: memref<1x8xf32, #tpu.memory_space<vmem>>, %arg6: memref<8x8xf32, #tpu.memory_space<vmem>>) attributes {dimension_semantics = [#tpu.dimension_semantics<parallel>], iteration_bounds = array<i64: 1>, scalar_prefetch = 0 : i64, scratch_operands = 0 : i64, tpu.core_type = #tpu.core_type<tc>, window_params = [{transform_indices = @transform_0, window_bounds = array<i64: 8, 16>}, {pipeline_mode = #tpu.pipeline_mode<synchronous>, transform_indices = @transform_1, window_bounds = array<i64: 16, 128>}, {pipeline_mode = #tpu.pipeline_mode<synchronous>, transform_indices = @transform_2, window_bounds = array<i64: 1, 128>}, {pipeline_mode = #tpu.pipeline_mode<synchronous>, transform_indices = @transform_3, window_bounds = array<i64: 128, 8>}, {pipeline_mode = #tpu.pipeline_mode<synchronous>, transform_indices = @transform_4, window_bounds = array<i64: 1, 8>}, {transform_indices = @transform_5, window_bounds = array<i64: 8, 8>}]} {
    %c0 = arith.constant 0 : index
    %c0_0 = arith.constant 0 : index
    %0 = vector.load %arg1[%c0, %c0_0] : memref<8x16xf32, #tpu.memory_space<vmem>>, vector<8x16xf32>
    %1 = arith.truncf %0 : vector<8x16xf32> to vector<8x16xbf16>
    %c0_1 = arith.constant 0 : index
    %c0_2 = arith.constant 0 : index
    %2 = vector.load %arg2[%c0_1, %c0_2] : memref<16x128xbf16, #tpu.memory_space<vmem>>, vector<16x128xbf16>
    %cst = arith.constant dense<0.000000e+00> : vector<8x128xf32>
    %3 = tpu.matmul %1, %2, %cst {dimension_numbers = #tpu.dot_dimension_numbers<[1], [0], [0], [1], [0, 0, 1, 1], [], []>} : vector<8x16xbf16>, vector<16x128xbf16>, vector<8x128xf32> -> vector<8x128xf32>
    %c0_3 = arith.constant 0 : index
    %c0_4 = arith.constant 0 : index
    %4 = vector.load %arg3[%c0_3, %c0_4] : memref<1x128xf32, #tpu.memory_space<vmem>>, vector<1x128xf32>
    %5 = vector.broadcast %4 : vector<1x128xf32> to vector<8x128xf32>
    %6 = arith.addf %3, %5 : vector<8x128xf32>
    %cst_5 = arith.constant 0.000000e+00 : f32
    %7 = vector.broadcast %cst_5 : f32 to vector<8x128xf32>
    %8 = arith.maximumf %6, %7 : vector<8x128xf32>
    %9 = arith.truncf %8 : vector<8x128xf32> to vector<8x128xbf16>
    %c0_6 = arith.constant 0 : index
    %c0_7 = arith.constant 0 : index
    %10 = vector.load %arg4[%c0_6, %c0_7] : memref<128x8xbf16, #tpu.memory_space<vmem>>, vector<128x8xbf16>
    %cst_8 = arith.constant dense<0.000000e+00> : vector<8x8xf32>
    %11 = tpu.matmul %9, %10, %cst_8 {dimension_numbers = #tpu.dot_dimension_numbers<[1], [0], [0], [1], [0, 0, 1, 1], [], []>} : vector<8x128xbf16>, vector<128x8xbf16>, vector<8x8xf32> -> vector<8x8xf32>
    %c0_9 = arith.constant 0 : index
    %c0_10 = arith.constant 0 : index
    %12 = vector.load %arg5[%c0_9, %c0_10] : memref<1x8xf32, #tpu.memory_space<vmem>>, vector<1x8xf32>
    %13 = vector.broadcast %12 : vector<1x8xf32> to vector<8x8xf32>
    %14 = arith.addf %11, %13 : vector<8x8xf32>
    %cst_11 = arith.constant 0.000000e+00 : f32
    %15 = vector.broadcast %cst_11 : f32 to vector<8x8xf32>
    %16 = arith.maximumf %14, %15 : vector<8x8xf32>
    %c0_12 = arith.constant 0 : index
    %c0_13 = arith.constant 0 : index
    %17 = vector.load %arg6[%c0_12, %c0_13] : memref<8x8xf32, #tpu.memory_space<vmem>>, vector<8x8xf32>
    tpu.vector_store %arg6[%c0_12, %c0_13], %16 {strides = array<i32>} : memref<8x8xf32, #tpu.memory_space<vmem>>, vector<8x8xf32>,
    return
  }
  func.func @transform_0(%arg0: i32) -> (i32, i32) {
    %c0_i32 = arith.constant 0 : i32
    %c0_i32_0 = arith.constant 0 : i32
    return %arg0, %c0_i32 : i32, i32
  }
  func.func @transform_1(%arg0: i32) -> (i32, i32) {
    %c0_i32 = arith.constant 0 : i32
    %c0_i32_0 = arith.constant 0 : i32
    %c0_i32_1 = arith.constant 0 : i32
    return %c0_i32, %c0_i32_0 : i32, i32
  }
  func.func @transform_2(%arg0: i32) -> (i32, i32) {
    %c0_i32 = arith.constant 0 : i32
    %c0_i32_0 = arith.constant 0 : i32
    %c0_i32_1 = arith.constant 0 : i32
    return %c0_i32, %c0_i32_0 : i32, i32
  }
  func.func @transform_3(%arg0: i32) -> (i32, i32) {
    %c0_i32 = arith.constant 0 : i32
    %c0_i32_0 = arith.constant 0 : i32
    %c0_i32_1 = arith.constant 0 : i32
    return %c0_i32, %c0_i32_0 : i32, i32
  }
  func.func @transform_4(%arg0: i32) -> (i32, i32) {
    %c0_i32 = arith.constant 0 : i32
    %c0_i32_0 = arith.constant 0 : i32
    %c0_i32_1 = arith.constant 0 : i32
    return %c0_i32, %c0_i32_0 : i32, i32
  }
  func.func @transform_5(%arg0: i32) -> (i32, i32) {
    %c0_i32 = arith.constant 0 : i32
    %c0_i32_0 = arith.constant 0 : i32
    return %arg0, %c0_i32 : i32, i32
  }
}

</mosaic_0001>

<bundles_post_ra>
// kernel: tower_forward.1
= control target key start
LH: loop header
LB: loop body
LE: loop exit
PB: predicated region body
PF: predicated region fallthrough
CT: control target
= control target key end

     0   :  { %v298_v1 = vmov 0.0   ;;  %vm39_vm0 = vcmask 130048   ;;  %vm299_vm1 = vmmov 0   ;;  %s379_s0 = inlined_call_operand.vmem [shape: f32[8,16], index: 0, kind: input, shape index: {}]   ;;  %s380_s1 = inlined_call_operand.vmem [shape: bf16[16,128], index: 1, kind: input, shape index: {}]   ;;  %s381_s2 = inlined_call_operand.vmem [shape: f32[1,128], index: 2, kind: input, shape index: {}]   ;;  %s382_s3 = inlined_call_operand.vmem [shape: bf16[128,8], index: 3, kind: input, shape index: {}]   ;;  %s383_s4 = inlined_call_operand.vmem [shape: f32[1,8], index: 4, kind: input, shape index: {}]   ;;  %s384_s5 = inlined_call_operand.hbm [shape: f32[8,8], index: 5, kind: output, shape index: {}]  }
   0x1   :  { %v265_v0 = vld [vmem:[%s380_s1] sm:$0xff]   ;;  %236 = vmatprep.subr.bf16.mxu0 %v298_v1  ;;  %242 = vmatprep.subr.bf16.mxu1 %v298_v1  ;;  %v267_v5 = vld [vmem:[%s382_s3 + $0x8] sm:$0xff]   ;;  %v268_v6 = vld [vmem:[%s382_s3 + $0x10] sm:$0xff]  }
   0x2   :  { %v22_v2 = vld [vmem:[%s379_s0] sm:$0xff]  ;;  %237 = vmatpush3.bf16.msra.mxu0 %v265_v0  ;;  %238 = vmatprep.mubr.msk.bf16.mxu0 %vm299_vm1, %v298_v1 }
   0x3   :  { %v266_v3 = vld [vmem:[%s382_s3] sm:$0xff]   ;;  %v23_v4 = vpack.c.bf16 %v22_v2, %v22_v2  ;;  %258 = vmatprep.mubr.msk.bf16.mxu1 %vm299_vm1, %v298_v1 }
   0x4   :  { %243 = vmatpush3.bf16.msra.mxu1 %v266_v3 }
   0x5   :  { %244 = vmatprep.subr.bf16.mxu1 %v298_v1  ;;  %239 = vmatmul.mubr.msk.bf16.vlgmr.msra.gmra.mrb[0].mxu0 %vm39_vm0, %v23_v4 }
   0x8   :  { %245 = vmatpush3.bf16.msra.mxu1 %v267_v5 }
   0x9   :  { %246 = vmatprep.subr.bf16.mxu1 %v298_v1 }
   0xa   :  { %10 = vsyncpa [#allocation3], 0  ;;  %v269_v7 = vld [vmem:[%s382_s3 + $0x18] sm:$0xff]   ;;  %v270_v8 = vld [vmem:[%s382_s3 + $0x20] sm:$0xff]   ;;  %s300_s15 = smov [#allocation2]   ;;  %vm197_vm2 = vcmask 64512  }
   0xb   :  { %v271_v9 = vld [vmem:[%s382_s3 + $0x28] sm:$0xff]   ;;  %v272_v10 = vld [vmem:[%s382_s3 + $0x30] sm:$0xff]   ;;  %v273_v11 = vld [vmem:[%s382_s3 + $0x38] sm:$0xff]   ;;  %s205_s3 = sshll.u32 %s300_s15, 4  ;;  %s206_s3 = int_to_ptr.vmem [resolvable:$true] %s205_s3 }
   0xc   :  { %247 = vmatpush3.bf16.msra.mxu1 %v268_v6  ;;  %v213_v12 = vld [vmem:[%s381_s2] ss:$0 sm:$0xff]  ;;  %s274_s2 = scalar_lea.vmem %s206_s3, 128  ;;  %p279_p1 = scmp.lt.s32.totalorder %s206_s3, %s206_s3 }
   0xd   :  { %248 = vmatprep.subr.bf16.mxu1 %v298_v1  ;;  %v216_v20 = vld [vmem:[%s383_s4] ss:$0 sm:$0xff]  ;;  %p275_p0 = scmp.ne.s32.totalorder %s206_s3, %s274_s2  ;;  %p280_p2 = scmp.lt.s32.totalorder %s274_s2, %s274_s2 }
   0xf   :  { %p281_p3 = por %p280_p2, %p279_p1 }
  0x10   :  { %249 = vmatpush3.bf16.msra.mxu1 %v269_v7 }
  0x11   :  { %250 = vmatprep.subr.bf16.mxu1 %v298_v1  ;;  %p282_p4 = pnand %p281_p3, %p275_p0 }
  0x14   :  { %251 = vmatpush3.bf16.msra.mxu1 %v270_v8 }
  0x15   :  { %252 = vmatprep.subr.bf16.mxu1 %v298_v1 }
  0x18   :  { %253 = vmatpush3.bf16.msra.mxu1 %v271_v9 }
  0x19   :  { %254 = vmatprep.subr.bf16.mxu1 %v298_v1 }
  0x1c   :  { %255 = vmatpush3.bf16.msra.mxu1 %v272_v10 }
  0x1d   :  { %256 = vmatprep.subr.bf16.mxu1 %v298_v1 }
  0x20   :  { %257 = vmatpush3.bf16.msra.mxu1 %v273_v11 }
  0xd8   :  { %v77_v13 = vpop.f32.mrb[0].mxu0 }
  0xd9   :  { %v78_v14 = vadd.f32 %v213_v12, %v77_v13  ;;  %v240_v15 = vpop.f32.mrb[1].mxu0 }
  0xda   :  { %v80_v16 = vpop.f32.mrb[2].mxu0 }
  0xdb   :  { %v83_v17 = vmax.f32 %v78_v14, 0.0  ;;  %v241_v18 = vpop.f32.mrb[3].mxu0 }
  0xdd   :  { %v84_v19 = vpack.c.bf16 %v83_v17, %v83_v17 }
  0xdf   :  { %259 = vmatmul.mubr.bf16.vlgmr.msra.gmra.mrb[0].mxu1 %v84_v19 }
 0x1b2   :  { %v190_v21 = vpop.f32.mrb[0].mxu1 }
 0x1b3   :  { %v191_v22 = vadd.f32 %v216_v20, %v190_v21  ;;  %v260_v23 = vpop.f32.mrb[1].mxu1 }
 0x1b4   :  { %v193_v24 = vpop.f32.mrb[2].mxu1 }
 0x1b5   :  { %v196_v25 = vmax.f32 %v191_v22, 0.0  ;;  %v261_v26 = vpop.f32.mrb[3].mxu1 }
 0x1b7   :  { %198 = vst.msk [vmem:[#allocation2] sm:$0xff] %vm197_vm2, %v196_v25 }
 0x1b8   :  { %285 = shalt.err (!%p282_p4)
}
 0x1b9   :  { %s286_s17 = scalar_lea.hbm %s384_s5, 128 }
 0x1ba   :  { %p287_p5 = scmp.ne.s32.totalorder %s384_s5, %s286_s17  ;;  %p290_p6 = scmp.lt.u32.totalorder %s286_s17, %s384_s5 }
 0x1bc   :  { %p292_p7 = pnand %p290_p6, %p287_p5 }
 0x1be   :  { %295 = shalt.err (!%p292_p7)
}
 0x1bf   :  { %208 = dma.vmem_to_hbm [thread:$0]  %s206_s3, 128, %s384_s5, [#allocation3]  }
 0x1c0   :  { %296 = dma.done.wait [#allocation3], 128  }
 0x1c1   :  { %297 = vsyncadd [#allocation3], 4294967168 }
 0x1c2   :  { %212 = vsyncpa [#allocation3], 1 }

</bundles_post_ra>
